<compile_context>
chip_gen: v7x
topology: tpu7x:2x2x1
jax: 0.10.0
libtpu: 0.0.40
codegen_flags: <defaults>
</compile_context>

<pallas_src>
import math

import jax
import jax.numpy as jnp
from jax.experimental import pallas as pl
from jax.experimental.pallas import tpu as pltpu

_LANE = 128
_SUBLANE = 8


def prepare_decoder_params(w, b):
    """One-time (init) parameter layout prep.

    w: [K, N] (= fc.weight.T), b: [N]
    Returns w_padded [8, 128] (zero-padded rows/cols -> clean (8,128) VMEM
    tile) and b_padded [1, 128].  Done once at init so the forward pass pays
    zero per-call XLA pad/reshape dispatches.
    """
    K, N = w.shape
    assert K <= _SUBLANE and N <= _LANE, "single-tile fast path only"
    w_padded = jnp.zeros((_SUBLANE, _LANE), dtype=jnp.float32).at[:K, :N].set(w)
    b_padded = jnp.zeros((1, _LANE), dtype=jnp.float32).at[0, :N].set(b)
    return w_padded, b_padded


def _decoder_kernel(x_ref, w_ref, b_ref, o_ref):
    # x_ref: [M, K], w_ref: [8, 128], b_ref: [1, 128], o_ref: [M, N]
    k = x_ref.shape[1]
    n = o_ref.shape[1]
    # Single MXU contraction (one vmatmul push + pop), f32 accumulate.
    # The static :k row-slice of the (8,128)-aligned weight tile is a cheap
    # partial-sublane load; padded rows exist only to keep the tile aligned.
    acc = jnp.dot(x_ref[...], w_ref[:k, :], preferred_element_type=jnp.float32)
    acc = acc + b_ref[...]  # [1,128] bias: sublane-direction broadcast (cheap)
    # Exact [M, N] output: one masked store, no wrapper-side slice needed.
    o_ref[...] = jnp.maximum(acc[:, :n], 0.0).astype(o_ref.dtype)


def decoder_forward(x, w_padded, b_padded, out_features):
    """ReLU(x @ W + b) with cached, pre-padded parameters.

    x: [M, K]; w_padded: [8, 128]; b_padded: [1, 128]; returns [M, out_features].
    """
    M, K = x.shape
    N = out_features
    return pl.pallas_call(
        _decoder_kernel,
        out_shape=jax.ShapeDtypeStruct((M, N), x.dtype),
        in_specs=[
            pl.BlockSpec(memory_space=pltpu.MemorySpace.VMEM),
            pl.BlockSpec(memory_space=pltpu.MemorySpace.VMEM),
            pl.BlockSpec(memory_space=pltpu.MemorySpace.VMEM),
        ],
        out_specs=pl.BlockSpec(memory_space=pltpu.MemorySpace.VMEM),
        cost_estimate=pl.CostEstimate(
            flops=2 * M * K * N,
            transcendentals=0,
            bytes_accessed=4 * (M * K + _SUBLANE * _LANE + _LANE + M * N),
        ),
    )(x, w_padded, b_padded)


def xavier_uniform(key, fan_in, fan_out, dtype=jnp.float32):
    # Matches torch.nn.init.xavier_uniform_ bound for a [out, in] Linear weight;
    # returned transposed as [in, out] so forward is x @ w.
    bound = math.sqrt(6.0 / (fan_in + fan_out))
    return jax.random.uniform(
        key, (fan_in, fan_out), dtype=dtype, minval=-bound, maxval=bound
    )


if __name__ == "__main__":
    in_channal = 4
    out_channel = 32
    batch = 8

    key = jax.random.PRNGKey(0)
    k_x, k_w = jax.random.split(key)

    # restart() semantics for fc: xavier_uniform weight, zero bias.
    # TODO(synk): fc1 / fc2 are initialized in the PyTorch module but unused in
    # forward, so they are not materialized here.
    w_fc = xavier_uniform(k_w, in_channal, out_channel)  # [K, N] = fc.weight.T
    b_fc = jnp.zeros((out_channel,), dtype=jnp.float32)

    # One-time parameter layout prep (cached; never re-done per forward call).
    w_pad, b_pad = prepare_decoder_params(w_fc, b_fc)
    w_pad, b_pad = jax.block_until_ready((w_pad, b_pad))

    x = jax.random.normal(k_x, (batch, in_channal), dtype=jnp.float32)

    out = decoder_forward(x, w_pad, b_pad, out_channel)
    out = jax.block_until_ready(out)

    # Sanity check against plain-JAX reference.
    ref = jnp.maximum(x @ w_fc + b_fc, 0.0)
    assert out.shape == (batch, out_channel)
    assert jnp.allclose(out, ref, atol=1e-5, rtol=1e-5)

    print("KERNEL_OK")
</pallas_src>

<mosaic_0001>
module attributes {stable_mosaic.version = 11 : i64} {
  func.func @_decoder_kernel(%arg0: memref<8x4xf32, #tpu.memory_space<vmem>>, %arg1: memref<8x128xf32, #tpu.memory_space<vmem>>, %arg2: memref<1x128xf32, #tpu.memory_space<vmem>>, %arg3: memref<8x32xf32, #tpu.memory_space<vmem>>) attributes {dimension_semantics = [], scalar_prefetch = 0 : i64, scratch_operands = 0 : i64, tpu.core_type = #tpu.core_type<tc>} {
    %c0 = arith.constant 0 : index
    %c0_0 = arith.constant 0 : index
    %0 = vector.load %arg0[%c0, %c0_0] : memref<8x4xf32, #tpu.memory_space<vmem>>, vector<8x4xf32>
    %c0_1 = arith.constant 0 : index
    %c0_2 = arith.constant 0 : index
    %1 = vector.load %arg1[%c0_1, %c0_2] : memref<8x128xf32, #tpu.memory_space<vmem>>, vector<4x128xf32>
    %cst = arith.constant dense<0.000000e+00> : vector<8x128xf32>
    %2 = tpu.matmul %0, %1, %cst {dimension_numbers = #tpu.dot_dimension_numbers<[1], [0], [0], [1], [0, 0, 1, 1], [], []>} : vector<8x4xf32>, vector<4x128xf32>, vector<8x128xf32> -> vector<8x128xf32>
    %c0_3 = arith.constant 0 : index
    %c0_4 = arith.constant 0 : index
    %3 = vector.load %arg2[%c0_3, %c0_4] : memref<1x128xf32, #tpu.memory_space<vmem>>, vector<1x128xf32>
    %4 = vector.broadcast %3 : vector<1x128xf32> to vector<8x128xf32>
    %5 = arith.addf %2, %4 : vector<8x128xf32>
    %6 = vector.extract_strided_slice %5 {offsets = [0, 0], sizes = [8, 32], strides = [1, 1]} : vector<8x128xf32> to vector<8x32xf32>
    %cst_5 = arith.constant 0.000000e+00 : f32
    %7 = vector.broadcast %cst_5 : f32 to vector<8x32xf32>
    %8 = arith.maximumf %6, %7 : vector<8x32xf32>
    %c0_6 = arith.constant 0 : index
    %c0_7 = arith.constant 0 : index
    %9 = vector.load %arg3[%c0_6, %c0_7] : memref<8x32xf32, #tpu.memory_space<vmem>>, vector<8x32xf32>
    tpu.vector_store %arg3[%c0_6, %c0_7], %8 {strides = array<i32>} : memref<8x32xf32, #tpu.memory_space<vmem>>, vector<8x32xf32>,
    return
  }
}

</mosaic_0001>

<bundles_post_ra>
// kernel: tpu_custom_call.1
= control target key start
LH: loop header
LB: loop body
LE: loop exit
PB: predicated region body
PF: predicated region fallthrough
CT: control target
= control target key end

     0   :  { %vm28_vm0 = vcmask 1043456   ;;  %v156_v2 = vmov 0.0   ;;  %vm157_vm1 = vmmov 0   ;;  %vm24_vm2 = vcmask 31744   ;;  %s200_s0 = inlined_call_operand.vmem [shape: f32[8,4], index: 0, kind: input, shape index: {}]   ;;  %s201_s1 = inlined_call_operand.vmem [shape: f32[8,128], index: 1, kind: input, shape index: {}]   ;;  %s202_s2 = inlined_call_operand.vmem [shape: f32[1,128], index: 2, kind: input, shape index: {}]   ;;  %s203_s3 = inlined_call_operand.hbm [shape: f32[8,32], index: 3, kind: output, shape index: {}]  }
   0x1   :  { %v16_v0 = vld [vmem:[%s201_s1] sm:$0xf]  ;;  %124 = vmatprep.subr.mxu0 %v156_v2  ;;  %126 = vmatprep.mubr.msk.f32.mxu0 %vm157_vm1, %v156_v2 }
   0x2   :  { %v15_v1 = vld [vmem:[%s200_s0] sm:$0xff] }
   0x3   :  { %8 = vsyncpa [#allocation3], 0  ;;  %125 = vmatpush3.msk.msra.mxu0 %vm28_vm0, %v16_v0  ;;  %v119_v3 = vld [vmem:[%s202_s2] ss:$0 sm:$0xff]  ;;  %s158_s18 = smov [#allocation2]   ;;  %vm103_vm3 = vcmask 261120  }
   0x4   :  { %127 = vmatmul.mubr.msk.f32.vlgmr.msra.gmra.mrb[0].mxu0 %vm24_vm2, %v15_v1  ;;  %s111_s1 = sshll.u32 %s158_s18, 4  ;;  %s112_s1 = int_to_ptr.vmem [resolvable:$true] %s111_s1 }
   0x5   :  { %s132_s0 = scalar_lea.vmem %s112_s1, 128  ;;  %p137_p1 = scmp.lt.s32.totalorder %s112_s1, %s112_s1 }
   0x6   :  { %p133_p0 = scmp.ne.s32.totalorder %s112_s1, %s132_s0  ;;  %p138_p2 = scmp.lt.s32.totalorder %s132_s0, %s132_s0 }
   0x8   :  { %p139_p3 = por %p138_p2, %p137_p1 }
   0xa   :  { %p140_p4 = pnand %p139_p3, %p133_p0 }
  0xd7   :  { %v98_v4 = vpop.f32.mrb[0].mxu0 }
  0xd8   :  { %v99_v5 = vadd.f32 %v119_v3, %v98_v4  ;;  %v128_v6 = vpop.f32.mrb[1].mxu0 }
  0xda   :  { %v102_v7 = vmax.f32 %v99_v5, 0.0 }
  0xdc   :  { %104 = vst.msk [vmem:[#allocation2] sm:$0xff] %vm103_vm3, %v102_v7 }
  0xdd   :  { %143 = shalt.err (!%p140_p4)
}
  0xde   :  { %s144_s2 = scalar_lea.hbm %s203_s3, 128 }
  0xdf   :  { %p145_p5 = scmp.ne.s32.totalorder %s203_s3, %s144_s2  ;;  %p148_p6 = scmp.lt.u32.totalorder %s144_s2, %s203_s3 }
  0xe1   :  { %p150_p7 = pnand %p148_p6, %p145_p5 }
  0xe3   :  { %153 = shalt.err (!%p150_p7)
}
  0xe4   :  { %114 = dma.vmem_to_hbm [thread:$0]  %s112_s1, 128, %s203_s3, [#allocation3]  }
  0xe5   :  { %154 = dma.done.wait [#allocation3], 128  }
  0xe6   :  { %155 = vsyncadd [#allocation3], 4294967168 }
  0xe7   :  { %118 = vsyncpa [#allocation3], 1 }

</bundles_post_ra>
